<compile_context>
chip_gen: v5e
topology: v5e:2x2
jax: 0.10.0
libtpu: 0.0.40
codegen_flags: <defaults>
</compile_context>

<pallas_src>
import functools

import jax
import jax.numpy as jnp
from jax.experimental import pallas as pl
from jax.experimental.pallas import tpu as pltpu


def _cross_attention_kernel(main_ref, guide_ref, wq_ref, wk_ref, wv_ref,
                            sum_ref, bias_ref, out_ref, *,
                            main_precision, guide_precision):
    """One row-tile of CrossAttention on lane-packed rows.

    `pack` logical rows share one physical (lane-dense) row; weights are
    block-diagonal replicas so each matmul acts independently per logical row.
    """
    m = main_ref[...]                        # [rt, pack*in1]
    g = guide_ref[...]                       # [rt, pack*in2]

    q = jnp.dot(m, wq_ref[...], preferred_element_type=jnp.float32,
                precision=main_precision)    # [rt, pack*hidden]
    k = jnp.dot(g, wk_ref[...], preferred_element_type=jnp.float32,
                precision=guide_precision)   # [rt, pack*hidden]
    v = jnp.dot(m, wv_ref[...], preferred_element_type=jnp.float32,
                precision=main_precision) + bias_ref[...]   # [rt, pack*out]

    # Per logical row: logit = sum_h q_h*k_h.  The block-structured ones
    # matrix performs the per-row lane-group sum AND broadcasts the result
    # over that row's out_dim lanes in a single MXU pass (MXU is ~free here).
    logit = jnp.dot(q * k, sum_ref[...], preferred_element_type=jnp.float32,
                    precision=jax.lax.Precision.HIGHEST)    # [rt, pack*out]

    # TODO(synk): dropout_rate=0.0 -> Dropout is the identity; no RNG path.
    # Overhang rows of a partial last block are don't-care and their writes
    # are masked by Pallas; all ops above are strictly row-wise.
    out_ref[...] = (jnp.exp(jnp.tanh(logit)) * v).astype(out_ref.dtype)


def _round_up(x, m):
    return (x + m - 1) // m * m


def cross_attention(main_feature, guide_feature, wq_t, wk_t, wv_t, bv,
                    *, max_tile_rows=4096, min_grid_blocks=4):
    """CrossAttention forward: [B,S,in1], [B,S,in2] -> [B,S,out]."""
    # TODO(synk): weights_only=True branch (return attention weights only) is
    # not implemented; this is the module's default (weights_only=False) path.
    B, S, in1 = main_feature.shape
    _, _, in2 = guide_feature.shape
    hidden = wq_t.shape[1]
    out_dim = wv_t.shape[1]
    out_dtype = main_feature.dtype

    N = B * S
    # Lane packing factor: 4 logical rows -> one 128-lane physical row for the
    # 32-wide main/out slabs.  Free (contiguous) reshapes only; fall back when
    # N is not divisible (no pad pass).
    pack = 4 if N % 4 == 0 else (2 if N % 2 == 0 else 1)
    n_p = N // pack

    main_p = main_feature.reshape(n_p, pack * in1)
    guide_p = guide_feature.reshape(n_p, pack * in2)

    # Tiny trace-time weight prep: block-diagonal replicas (kron with eye).
    def block_diag(w, dtype):
        eye_p = jnp.eye(pack, dtype=jnp.float32)
        return jnp.kron(eye_p, w.astype(jnp.float32)).astype(dtype)

    wq_bd = block_diag(wq_t, main_p.dtype)                      # [p*in1, p*H]
    wk_bd = block_diag(wk_t, guide_p.dtype)                     # [p*in2, p*H]
    wv_bd = block_diag(wv_t, main_p.dtype)                      # [p*in1, p*O]
    sum_bcast = block_diag(jnp.ones((hidden, out_dim), jnp.float32),
                           jnp.float32)                         # [p*H,  p*O]
    bias = jnp.tile(bv.astype(jnp.float32).reshape(1, out_dim), (1, pack))

    # Row tile: large enough to amortize ~0.35us/step grid overhead, but keep
    # >= min_grid_blocks blocks so v7x's two cores both get work.  VMEM use at
    # the cap is a few MB -- far under every generation's scoped limit.
    max_rt = max(8, max_tile_rows // pack)
    if n_p <= 8:
        rt = n_p                                   # single block == full extent
    else:
        rt = min(max_rt, _round_up(pl.cdiv(n_p, min_grid_blocks), 8))
    grid = (pl.cdiv(n_p, rt),)                     # ragged tail -> partial block

    main_prec = (jax.lax.Precision.HIGHEST
                 if main_p.dtype == jnp.float32 else None)
    guide_prec = (jax.lax.Precision.HIGHEST
                  if guide_p.dtype == jnp.float32 else None)

    kernel = functools.partial(_cross_attention_kernel,
                               main_precision=main_prec,
                               guide_precision=guide_prec)

    out_p = pl.pallas_call(
        kernel,
        out_shape=jax.ShapeDtypeStruct((n_p, pack * out_dim), out_dtype),
        grid_spec=pltpu.PrefetchScalarGridSpec(
            num_scalar_prefetch=0,
            grid=grid,
            in_specs=[
                pl.BlockSpec((rt, pack * in1), lambda i: (i, 0)),        # main rows
                pl.BlockSpec((rt, pack * in2), lambda i: (i, 0)),        # guide rows
                pl.BlockSpec((pack * in1, pack * hidden), lambda i: (0, 0)),   # Wq (bd)
                pl.BlockSpec((pack * in2, pack * hidden), lambda i: (0, 0)),   # Wk (bd)
                pl.BlockSpec((pack * in1, pack * out_dim), lambda i: (0, 0)),  # Wv (bd)
                pl.BlockSpec((pack * hidden, pack * out_dim), lambda i: (0, 0)),  # sum+bcast
                pl.BlockSpec((1, pack * out_dim), lambda i: (0, 0)),     # V bias (tiled)
            ],
            out_specs=pl.BlockSpec((rt, pack * out_dim), lambda i: (i, 0)),
        ),
        compiler_params=pltpu.CompilerParams(
            dimension_semantics=("parallel",)),
    )(main_p, guide_p, wq_bd, wk_bd, wv_bd, sum_bcast, bias)

    return out_p.reshape(B, S, out_dim)


def cross_attention_reference(main_feature, guide_feature, wq_t, wk_t, wv_t, bv):
    hp = jax.lax.Precision.HIGHEST
    m = main_feature.astype(jnp.float32)
    g = guide_feature.astype(jnp.float32)
    q = jnp.dot(m, wq_t, precision=hp)
    k = jnp.dot(g, wk_t, precision=hp)
    v = jnp.dot(m, wv_t, precision=hp) + bv
    score = jnp.exp(jnp.tanh(jnp.sum(q * k, axis=-1, keepdims=True)))
    return score * v


if __name__ == "__main__":
    in1_dim, in2_dim, hidden_dim, out_dim = 32, 24, 16, 32

    key = jax.random.PRNGKey(0)
    k_wq, k_wk, k_wv, k_bv, k_data = jax.random.split(key, 5)

    # Deterministic params mimicking nn.Linear's U(-1/sqrt(fan_in), 1/sqrt(fan_in)).
    def linear_init(k, fan_in, fan_out):
        bound = 1.0 / jnp.sqrt(jnp.float32(fan_in))
        return jax.random.uniform(k, (fan_in, fan_out), jnp.float32,
                                  minval=-bound, maxval=bound)

    wq_t = linear_init(k_wq, in1_dim, hidden_dim)   # Q: in1 -> hidden (no bias)
    wk_t = linear_init(k_wk, in2_dim, hidden_dim)   # K: in2 -> hidden (no bias)
    wv_t = linear_init(k_wv, in1_dim, out_dim)      # V: in1 -> out  (with bias)
    bv = jax.random.uniform(k_bv, (out_dim,), jnp.float32,
                            minval=-1.0 / jnp.sqrt(jnp.float32(in1_dim)),
                            maxval=1.0 / jnp.sqrt(jnp.float32(in1_dim)))

    fwd = jax.jit(cross_attention)

    def run_case(B, S, subkey, dtype=jnp.float32):
        k_main, k_guide = jax.random.split(subkey)
        main_feature = jax.random.normal(
            k_main, (B, S, in1_dim), jnp.float32).astype(dtype)
        guide_feature = jax.random.normal(
            k_guide, (B, S, in2_dim), jnp.float32).astype(dtype)
        out = jax.block_until_ready(
            fwd(main_feature, guide_feature, wq_t, wk_t, wv_t, bv))
        ref = cross_attention_reference(main_feature, guide_feature,
                                        wq_t, wk_t, wv_t, bv)
        return out, ref

    k1, k2, k3, k4 = jax.random.split(k_data, 4)

    # 1) Tiny shape consistent with the module (N=16 -> pack=4, single block).
    out, ref = run_case(2, 8, k1)
    assert out.shape == (2, 8, out_dim)
    assert jnp.allclose(out, ref, atol=1e-4, rtol=1e-4), "f32 small mismatch"

    # 2) Multi-tile + ragged (partial) last block: N=2000 -> 500 packed rows.
    out, ref = run_case(4, 500, k2)
    assert out.shape == (4, 500, out_dim)
    assert jnp.allclose(out, ref, atol=1e-4, rtol=1e-4), "f32 tiled mismatch"

    # 3) N not divisible by 4 -> pack fallback path (N=7, pack=1).
    out, ref = run_case(1, 7, k3)
    assert out.shape == (1, 7, out_dim)
    assert jnp.allclose(out, ref, atol=1e-4, rtol=1e-4), "f32 fallback mismatch"

    # 4) Native bf16 inputs (no wrapper casts): bf16 operands, f32 epilogue,
    #    bf16 output; compared against the f32 reference with a loose bound.
    out, ref = run_case(2, 100, k4, dtype=jnp.bfloat16)
    assert out.dtype == jnp.bfloat16
    assert jnp.max(jnp.abs(out.astype(jnp.float32) - ref)) < 2.5e-1, "bf16 mismatch"

    print("KERNEL_OK")
</pallas_src>

<mosaic_0001>
module attributes {stable_mosaic.version = 11 : i64} {
  func.func @_cross_attention_kernel(%arg0: i32, %arg1: memref<4x128xf32, #tpu.memory_space<vmem>>, %arg2: memref<4x96xf32, #tpu.memory_space<vmem>>, %arg3: memref<128x64xf32, #tpu.memory_space<vmem>>, %arg4: memref<96x64xf32, #tpu.memory_space<vmem>>, %arg5: memref<128x128xf32, #tpu.memory_space<vmem>>, %arg6: memref<64x128xf32, #tpu.memory_space<vmem>>, %arg7: memref<1x128xf32, #tpu.memory_space<vmem>>, %arg8: memref<4x128xf32, #tpu.memory_space<vmem>>) attributes {dimension_semantics = [#tpu.dimension_semantics<parallel>], iteration_bounds = array<i64: 1>, scalar_prefetch = 0 : i64, scratch_operands = 0 : i64, tpu.core_type = #tpu.core_type<tc>, window_params = [{transform_indices = @transform_0, window_bounds = array<i64: 4, 128>}, {transform_indices = @transform_1, window_bounds = array<i64: 4, 96>}, {pipeline_mode = #tpu.pipeline_mode<synchronous>, transform_indices = @transform_2, window_bounds = array<i64: 128, 64>}, {pipeline_mode = #tpu.pipeline_mode<synchronous>, transform_indices = @transform_3, window_bounds = array<i64: 96, 64>}, {pipeline_mode = #tpu.pipeline_mode<synchronous>, transform_indices = @transform_4, window_bounds = array<i64: 128, 128>}, {pipeline_mode = #tpu.pipeline_mode<synchronous>, transform_indices = @transform_5, window_bounds = array<i64: 64, 128>}, {pipeline_mode = #tpu.pipeline_mode<synchronous>, transform_indices = @transform_6, window_bounds = array<i64: 1, 128>}, {transform_indices = @transform_7, window_bounds = array<i64: 4, 128>}]} {
    %c0 = arith.constant 0 : index
    %c0_0 = arith.constant 0 : index
    %0 = vector.load %arg1[%c0, %c0_0] : memref<4x128xf32, #tpu.memory_space<vmem>>, vector<4x128xf32>
    %c0_1 = arith.constant 0 : index
    %c0_2 = arith.constant 0 : index
    %1 = vector.load %arg2[%c0_1, %c0_2] : memref<4x96xf32, #tpu.memory_space<vmem>>, vector<4x96xf32>
    %c0_3 = arith.constant 0 : index
    %c0_4 = arith.constant 0 : index
    %2 = vector.load %arg3[%c0_3, %c0_4] : memref<128x64xf32, #tpu.memory_space<vmem>>, vector<128x64xf32>
    %cst = arith.constant dense<0.000000e+00> : vector<4x64xf32>
    %3 = tpu.matmul %0, %2, %cst {dimension_numbers = #tpu.dot_dimension_numbers<[1], [0], [0], [1], [0, 0, 1, 1], [], []>, precision = #tpu.contract_precision<fp32>} : vector<4x128xf32>, vector<128x64xf32>, vector<4x64xf32> -> vector<4x64xf32>
    %c0_5 = arith.constant 0 : index
    %c0_6 = arith.constant 0 : index
    %4 = vector.load %arg4[%c0_5, %c0_6] : memref<96x64xf32, #tpu.memory_space<vmem>>, vector<96x64xf32>
    %cst_7 = arith.constant dense<0.000000e+00> : vector<4x64xf32>
    %5 = tpu.matmul %1, %4, %cst_7 {dimension_numbers = #tpu.dot_dimension_numbers<[1], [0], [0], [1], [0, 0, 1, 1], [], []>, precision = #tpu.contract_precision<fp32>} : vector<4x96xf32>, vector<96x64xf32>, vector<4x64xf32> -> vector<4x64xf32>
    %c0_8 = arith.constant 0 : index
    %c0_9 = arith.constant 0 : index
    %6 = vector.load %arg5[%c0_8, %c0_9] : memref<128x128xf32, #tpu.memory_space<vmem>>, vector<128x128xf32>
    %cst_10 = arith.constant dense<0.000000e+00> : vector<4x128xf32>
    %7 = tpu.matmul %0, %6, %cst_10 {dimension_numbers = #tpu.dot_dimension_numbers<[1], [0], [0], [1], [0, 0, 1, 1], [], []>, precision = #tpu.contract_precision<fp32>} : vector<4x128xf32>, vector<128x128xf32>, vector<4x128xf32> -> vector<4x128xf32>
    %c0_11 = arith.constant 0 : index
    %c0_12 = arith.constant 0 : index
    %8 = vector.load %arg7[%c0_11, %c0_12] : memref<1x128xf32, #tpu.memory_space<vmem>>, vector<1x128xf32>
    %9 = vector.broadcast %8 : vector<1x128xf32> to vector<4x128xf32>
    %10 = arith.addf %7, %9 : vector<4x128xf32>
    %11 = arith.mulf %3, %5 : vector<4x64xf32>
    %c0_13 = arith.constant 0 : index
    %c0_14 = arith.constant 0 : index
    %12 = vector.load %arg6[%c0_13, %c0_14] : memref<64x128xf32, #tpu.memory_space<vmem>>, vector<64x128xf32>
    %cst_15 = arith.constant dense<0.000000e+00> : vector<4x128xf32>
    %13 = tpu.matmul %11, %12, %cst_15 {dimension_numbers = #tpu.dot_dimension_numbers<[1], [0], [0], [1], [0, 0, 1, 1], [], []>, precision = #tpu.contract_precision<fp32>} : vector<4x64xf32>, vector<64x128xf32>, vector<4x128xf32> -> vector<4x128xf32>
    %14 = math.tanh %13 : vector<4x128xf32>
    %15 = math.exp %14 : vector<4x128xf32>
    %16 = arith.mulf %15, %10 : vector<4x128xf32>
    %c0_16 = arith.constant 0 : index
    %c0_17 = arith.constant 0 : index
    %17 = vector.load %arg8[%c0_16, %c0_17] : memref<4x128xf32, #tpu.memory_space<vmem>>, vector<4x128xf32>
    tpu.vector_store %arg8[%c0_16, %c0_17], %16 {strides = array<i32>} : memref<4x128xf32, #tpu.memory_space<vmem>>, vector<4x128xf32>,
    return
  }
  func.func @transform_0(%arg0: i32) -> (i32, i32) {
    %c0_i32 = arith.constant 0 : i32
    %c0_i32_0 = arith.constant 0 : i32
    return %arg0, %c0_i32 : i32, i32
  }
  func.func @transform_1(%arg0: i32) -> (i32, i32) {
    %c0_i32 = arith.constant 0 : i32
    %c0_i32_0 = arith.constant 0 : i32
    return %arg0, %c0_i32 : i32, i32
  }
  func.func @transform_2(%arg0: i32) -> (i32, i32) {
    %c0_i32 = arith.constant 0 : i32
    %c0_i32_0 = arith.constant 0 : i32
    %c0_i32_1 = arith.constant 0 : i32
    return %c0_i32, %c0_i32_0 : i32, i32
  }
  func.func @transform_3(%arg0: i32) -> (i32, i32) {
    %c0_i32 = arith.constant 0 : i32
    %c0_i32_0 = arith.constant 0 : i32
    %c0_i32_1 = arith.constant 0 : i32
    return %c0_i32, %c0_i32_0 : i32, i32
  }
  func.func @transform_4(%arg0: i32) -> (i32, i32) {
    %c0_i32 = arith.constant 0 : i32
    %c0_i32_0 = arith.constant 0 : i32
    %c0_i32_1 = arith.constant 0 : i32
    return %c0_i32, %c0_i32_0 : i32, i32
  }
  func.func @transform_5(%arg0: i32) -> (i32, i32) {
    %c0_i32 = arith.constant 0 : i32
    %c0_i32_0 = arith.constant 0 : i32
    %c0_i32_1 = arith.constant 0 : i32
    return %c0_i32, %c0_i32_0 : i32, i32
  }
  func.func @transform_6(%arg0: i32) -> (i32, i32) {
    %c0_i32 = arith.constant 0 : i32
    %c0_i32_0 = arith.constant 0 : i32
    %c0_i32_1 = arith.constant 0 : i32
    return %c0_i32, %c0_i32_0 : i32, i32
  }
  func.func @transform_7(%arg0: i32) -> (i32, i32) {
    %c0_i32 = arith.constant 0 : i32
    %c0_i32_0 = arith.constant 0 : i32
    return %arg0, %c0_i32 : i32, i32
  }
}

</mosaic_0001>

<bundles_post_ra>
// kernel: cross_attention.1
= control target key start
LH: loop header
LB: loop body
LE: loop exit
PB: predicated region body
PF: predicated region fallthrough
CT: control target
= control target key end

     0   :  { %vm397_vm0 = vcmask 785408   ;;  %vm1060_vm1 = vcmask 523264   ;;  %s2267_s2 = inlined_call_operand.vmem [shape: f32[128,64], index: 2, kind: input, shape index: {}]   ;;  %s2268_s3 = inlined_call_operand.vmem [shape: f32[96,64], index: 3, kind: input, shape index: {}]   ;;  %s2269_s0 = inlined_call_operand.vmem [shape: f32[4,128], index: 0, kind: input, shape index: {}]   ;;  %s2270_s1 = inlined_call_operand.vmem [shape: f32[4,96], index: 1, kind: input, shape index: {}]   ;;  %s2271_s4 = inlined_call_operand.vmem [shape: f32[128,128], index: 4, kind: input, shape index: {}]   ;;  %s2272_s6 = inlined_call_operand.vmem [shape: f32[1,128], index: 6, kind: input, shape index: {}]   ;;  %s2273_s5 = inlined_call_operand.vmem [shape: f32[64,128], index: 5, kind: input, shape index: {}]   ;;  %s2274_s7 = inlined_call_operand.vmem [shape: f32[4,128], index: 7, kind: output, shape index: {}]  }
   0x1   :  { %v43_v0 = vld [vmem:[%s2267_s2 + $0x78] sm:$0xff]  ;;  %v42_v1 = vld [vmem:[%s2267_s2 + $0x70] sm:$0xff]  ;;  %v41_v2 = vld [vmem:[%s2267_s2 + $0x68] sm:$0xff] }
   0x2   :  { %v1364_v3 = vand.u32 4294901760, %v43_v0  ;;  %v1366_v4 = vand.u32 4294901760, %v42_v1  ;;  %v1368_v5 = vand.u32 4294901760, %v41_v2  ;;  %v40_v6 = vld [vmem:[%s2267_s2 + $0x60] sm:$0xff]  ;;  %v39_v7 = vld [vmem:[%s2267_s2 + $0x58] sm:$0xff]  ;;  %v38_v8 = vld [vmem:[%s2267_s2 + $0x50] sm:$0xff] }
   0x3   :  { %v1379_v9 = vand.u32 4294901760, %v40_v6  ;;  %v1381_v10 = vand.u32 4294901760, %v39_v7  ;;  %v1383_v11 = vand.u32 4294901760, %v38_v8  ;;  %v37_v12 = vld [vmem:[%s2267_s2 + $0x48] sm:$0xff]  ;;  %v36_v13 = vld [vmem:[%s2267_s2 + $0x40] sm:$0xff]  ;;  %v35_v21 = vld [vmem:[%s2267_s2 + $0x38] sm:$0xff] }
   0x4   :  { %v1392_v14 = vsub.f32 %v43_v0, %v1364_v3  ;;  %45 = vmatpush.msra.mxu0 %v1364_v3  ;;  %v1396_v15 = vsub.f32 %v42_v1, %v1366_v4  ;;  %241 = vmatpush.msra.mxu3 %v1364_v3  ;;  %v1400_v16 = vsub.f32 %v41_v2, %v1368_v5  ;;  %v1402_v17 = vand.u32 4294901760, %v37_v12  ;;  %v34_v34 = vld [vmem:[%s2267_s2 + $0x30] sm:$0xff]  ;;  %v33_v35 = vld [vmem:[%s2267_s2 + $0x28] sm:$0xff]  ;;  %v32_v42 = vld [vmem:[%s2267_s2 + $0x20] sm:$0xff] }
   0x5   :  { %v1405_v18 = vsub.f32 %v40_v6, %v1379_v9  ;;  %v1408_v19 = vsub.f32 %v39_v7, %v1381_v10  ;;  %v1410_v20 = vand.u32 4294901760, %v36_v13  ;;  %v1421_v25 = vsub.f32 %v38_v8, %v1383_v11  ;;  %v31_v48 = vld [vmem:[%s2267_s2 + $0x18] sm:$0xff]  ;;  %v30_v53 = vld [vmem:[%s2267_s2 + $0x10] sm:$0xff]  ;;  %v29_v60 = vld [vmem:[%s2267_s2 + $0x8] sm:$0xff] }
   0x6   :  { %188 = vmatpush.msra.mxu2 %v1392_v14  ;;  %47 = vmatpush.msra.mxu0 %v1366_v4  ;;  %v2291_v22 = vand.u32 4294901760, %v1392_v14  ;;  %v2288_v23 = vand.u32 4294901760, %v1396_v15  ;;  %v2287_v24 = vand.u32 4294901760, %v1400_v16  ;;  %v1426_v27 = vsub.f32 %v37_v12, %v1402_v17  ;;  %v396_v55 = vld [vmem:[%s2268_s3 + $0x58] sm:$0xff]  ;;  %v395_v61 = vld [vmem:[%s2268_s3 + $0x50] sm:$0xff]  ;;  %v28_v6 = vld [vmem:[%s2267_s2] sm:$0xff] }
   0x7   :  { %243 = vmatpush.msra.mxu3 %v1366_v4  ;;  %v2286_v26 = vand.u32 4294901760, %v1405_v18  ;;  %v2283_v28 = vand.u32 4294901760, %v1408_v19  ;;  %v1440_v32 = vand.u32 4294901760, %v35_v21  ;;  %v1444_v33 = vsub.f32 %v36_v13, %v1410_v20  ;;  %v394_v13 = vld [vmem:[%s2268_s3 + $0x48] sm:$0xff] }
   0x8   :  { %191 = vmatpush.msra.mxu2 %v1396_v15  ;;  %49 = vmatpush.msra.mxu0 %v1368_v5  ;;  %v88_v29 = vsub.f32 %v1392_v14, %v2291_v22  ;;  %v94_v30 = vsub.f32 %v1396_v15, %v2288_v23  ;;  %v100_v31 = vsub.f32 %v1400_v16, %v2287_v24  ;;  %v2282_v39 = vand.u32 4294901760, %v1421_v25 }
   0x9   :  { %245 = vmatpush.msra.mxu3 %v1368_v5  ;;  %v106_v38 = vsub.f32 %v1405_v18, %v2286_v26  ;;  %v112_v40 = vsub.f32 %v1408_v19, %v2283_v28  ;;  %v2280_v41 = vand.u32 4294901760, %v1426_v27  ;;  %v1468_v44 = vsub.f32 %v35_v21, %v1440_v32 }
   0xa   :  { %194 = vmatpush.msra.mxu2 %v1400_v16  ;;  %v89_v36 = vand.u32 4294901760, %v88_v29  ;;  %51 = vmatpush.msra.mxu0 %v1379_v9  ;;  %v95_v37 = vand.u32 4294901760, %v94_v30  ;;  %v101_v43 = vand.u32 4294901760, %v100_v31  ;;  %v1470_v45 = vand.u32 4294901760, %v34_v34 }
   0xb   :  { %247 = vmatpush.msra.mxu3 %v1379_v9  ;;  %v1472_v46 = vand.u32 4294901760, %v33_v35  ;;  %v2279_v47 = vand.u32 4294901760, %v1444_v33  ;;  %v107_v49 = vand.u32 4294901760, %v106_v38  ;;  %v118_v50 = vsub.f32 %v1421_v25, %v2282_v39 }
   0xc   :  { %90 = vmatpush.msra.mxu1 %v89_v36  ;;  %197 = vmatpush.msra.mxu2 %v1405_v18  ;;  %v1485_v51 = vsub.f32 %v34_v34, %v1470_v45  ;;  %v1487_v52 = vand.u32 4294901760, %v32_v42  ;;  %v113_v54 = vand.u32 4294901760, %v112_v40  ;;  %v124_v56 = vsub.f32 %v1426_v27, %v2280_v41 }
   0xd   :  { %53 = vmatpush.msra.mxu0 %v1381_v10  ;;  %249 = vmatpush.msra.mxu3 %v1381_v10  ;;  %v1502_v57 = vsub.f32 %v33_v35, %v1472_v46  ;;  %v2278_v58 = vand.u32 4294901760, %v1468_v44  ;;  %v1505_v59 = vand.u32 4294901760, %v31_v48  ;;  %v130_v62 = vsub.f32 %v1444_v33, %v2279_v47 }
   0xe   :  { %96 = vmatpush.msra.mxu1 %v95_v37  ;;  %200 = vmatpush.msra.mxu2 %v1408_v19  ;;  %v1518_v63 = vand.u32 4294901760, %v30_v53  ;;  %v119_v0 = vand.u32 4294901760, %v118_v50  ;;  %v1522_v1 = vsub.f32 %v32_v42, %v1487_v52  ;;  %v2276_v2 = vand.u32 4294901760, %v1485_v51  ;;  %v393_v37 = vld [vmem:[%s2268_s3 + $0x40] sm:$0xff] }
   0xf   :  { %55 = vmatpush.msra.mxu0 %v1383_v11  ;;  %251 = vmatpush.msra.mxu3 %v1383_v11  ;;  %v1528_v7 = vand.u32 4294901760, %v396_v55  ;;  %v1532_v8 = vand.u32 4294901760, %v29_v60  ;;  %v1534_v12 = vand.u32 4294901760, %v395_v61  ;;  %v125_v21 = vand.u32 4294901760, %v124_v56 }
  0x10   :  { %102 = vmatpush.msra.mxu1 %v101_v43  ;;  %203 = vmatpush.msra.mxu2 %v1421_v25  ;;  %2298 = vst [vmem:[#allocation2_spill] sm:$0xff] %v1518_v63  ;;  %v136_v29 = vsub.f32 %v1468_v44, %v2278_v58  ;;  %v1544_v30 = vsub.f32 %v31_v48, %v1505_v59  ;;  %v2275_v31 = vand.u32 4294901760, %v1502_v57  ;;  %v131_v34 = vand.u32 4294901760, %v130_v62  ;;  %v392_v48 = vld [vmem:[%s2268_s3 + $0x38] sm:$0xff] }
  0x11   :  { %57 = vmatpush.msra.mxu0 %v1402_v17  ;;  %253 = vmatpush.msra.mxu3 %v1402_v17  ;;  %2299 = vst [vmem:[#allocation3_spill] sm:$0xff] %v1532_v8  ;;  %v1550_v35 = vsub.f32 %v30_v53, %v1518_v63  ;;  %v1552_v36 = vand.u32 4294901760, %v28_v6  ;;  %v142_v38 = vsub.f32 %v1485_v51, %v2276_v2  ;;  %v2277_v40 = vand.u32 4294901760, %v1522_v1 }
  0x12   :  { %108 = vmatpush.msra.mxu1 %v107_v49  ;;  %206 = vmatpush.msra.mxu2 %v1426_v27  ;;  %v1563_v42 = vsub.f32 %v396_v55, %v1528_v7  ;;  %v1565_v43 = vand.u32 4294901760, %v394_v13  ;;  %v1573_v49 = vsub.f32 %v29_v60, %v1532_v8  ;;  %v1576_v50 = vsub.f32 %v395_v61, %v1534_v12 }
  0x13   :  { %59 = vmatpush.msra.mxu0 %v1410_v20  ;;  %255 = vmatpush.msra.mxu3 %v1410_v20  ;;  %2300 = vst [vmem:[#allocation4_spill] sm:$0xff] %v1552_v36  ;;  %v137_v53 = vand.u32 4294901760, %v136_v29  ;;  %v2281_v55 = vand.u32 4294901760, %v1544_v30  ;;  %v1583_v56 = vand.u32 4294901760, %v393_v37  ;;  %v1588_v60 = vsub.f32 %v28_v6, %v1552_v36 }
  0x14   :  { %114 = vmatpush.msra.mxu1 %v113_v54  ;;  %209 = vmatpush.msra.mxu2 %v1444_v33  ;;  %v148_v54 = vsub.f32 %v1502_v57, %v2275_v31  ;;  %v2284_v61 = vand.u32 4294901760, %v1550_v35  ;;  %v1591_v62 = vand.u32 4294901760, %v392_v48  ;;  %v154_v29 = vsub.f32 %v1522_v1, %v2277_v40 }
  0x15   :  { %61 = vmatpush.msra.mxu0 %v1440_v32  ;;  %257 = vmatpush.msra.mxu3 %v1440_v32  ;;  %2301 = vst [vmem:[#allocation5_spill] sm:$0xff] %v1588_v60  ;;  %v2285_v31 = vand.u32 4294901760, %v1563_v42  ;;  %v1602_v6 = vsub.f32 %v394_v13, %v1565_v43  ;;  %v2290_v2 = vand.u32 4294901760, %v1573_v49  ;;  %v160_v13 = vsub.f32 %v1544_v30, %v2281_v55 }
  0x16   :  { %120 = vmatpush.msra.mxu1 %v119_v0  ;;  %212 = vmatpush.msra.mxu2 %v1468_v44  ;;  %v391_v0 = vld [vmem:[%s2268_s3 + $0x30] sm:$0xff]  ;;  %v149_v40 = vand.u32 4294901760, %v148_v54  ;;  %v1616_v58 = vsub.f32 %v393_v37, %v1583_v56  ;;  %v2292_v41 = vand.u32 4294901760, %v1588_v60  ;;  %v1627_v54 = vsub.f32 %v392_v48, %v1591_v62  ;;  %v389_v37 = vld [vmem:[%s2268_s3 + $0x20] sm:$0xff] }
  0x17   :  { %63 = vmatpush.msra.mxu0 %v1470_v45  ;;  %259 = vmatpush.msra.mxu3 %v1470_v45  ;;  %v1618_v47 = vand.u32 4294901760, %v391_v0  ;;  %v155_v55 = vand.u32 4294901760, %v154_v29  ;;  %v445_v39 = vsub.f32 %v1563_v42, %v2285_v31  ;;  %v2293_v28 = vand.u32 4294901760, %v1602_v6  ;;  %v388_v29 = vld [vmem:[%s2268_s3 + $0x18] sm:$0xff] }
  0x18   :  { %126 = vmatpush.msra.mxu1 %v125_v21  ;;  %215 = vmatpush.msra.mxu2 %v1485_v51  ;;  %v143_v21 = vand.u32 4294901760, %v142_v38  ;;  %v390_v38 = vld [vmem:[%s2268_s3 + $0x28] sm:$0xff]  ;;  %v172_v48 = vsub.f32 %v1573_v49, %v2290_v2  ;;  %v161_v31 = vand.u32 4294901760, %v160_v13  ;;  %v1655_v23 = vand.u32 4294901760, %v389_v37  ;;  %v387_v13 = vld [vmem:[%s2268_s3 + $0x10] sm:$0xff] }
  0x19   :  { %65 = vmatpush.msra.mxu0 %v1472_v46  ;;  %261 = vmatpush.msra.mxu3 %v1472_v46  ;;  %v1653_v24 = vsub.f32 %v391_v0, %v1618_v47  ;;  %v178_v2 = vsub.f32 %v1588_v60, %v2292_v41  ;;  %v446_v0 = vand.u32 4294901760, %v445_v39  ;;  %v457_v22 = vsub.f32 %v1602_v6, %v2293_v28 }
  0x1a   :  { %132 = vmatpush.msra.mxu1 %v131_v34  ;;  %218 = vmatpush.msra.mxu2 %v1502_v57  ;;  %v2289_v34 = vand.u32 4294901760, %v1576_v50  ;;  %v1673_v26 = vand.u32 4294901760, %v388_v29  ;;  %v173_v41 = vand.u32 4294901760, %v172_v48  ;;  %v2302_v39 = vand.u32 4294901760, %v1616_v58 }
  0x1b   :  { %67 = vmatpush.msra.mxu0 %v1487_v52  ;;  %263 = vmatpush.msra.mxu3 %v1487_v52  ;;  %v2303_v48 = vand.u32 4294901760, %v1392_v14  ;;  %v2305_v14 = vand.u32 4294901760, %v1396_v15  ;;  %v2307_v15 = vand.u32 4294901760, %v1400_v16  ;;  %v2308_v16 = vand.u32 4294901760, %v1405_v18 }
  0x1c   :  { %138 = vmatpush.msra.mxu1 %v137_v53  ;;  %221 = vmatpush.msra.mxu2 %v1522_v1  ;;  %v166_v53 = vsub.f32 %v1550_v35, %v2284_v61  ;;  %v1637_v61 = vand.u32 4294901760, %v390_v38 }
  0x1d   :  { %69 = vmatpush.msra.mxu0 %v1505_v59  ;;  %265 = vmatpush.msra.mxu3 %v1505_v59 }
  0x1e   :  { %144 = vmatpush.msra.mxu1 %v143_v21  ;;  %224 = vmatpush.msra.mxu2 %v1544_v30  ;;  %v451_v21 = vsub.f32 %v1576_v50, %v2289_v34  ;;  %v167_v34 = vand.u32 4294901760, %v166_v53  ;;  %v1671_v53 = vsub.f32 %v390_v38, %v1637_v61  ;;  %v463_v38 = vsub.f32 %v1616_v58, %v2302_v39 }
  0x1f   :  { %71 = vmatpush.msra.mxu0 %v1518_v63  ;;  %267 = vmatpush.msra.mxu3 %v1518_v63  ;;  %v1688_v63 = vand.u32 4294901760, %v387_v13  ;;  %v458_v39 = vand.u32 4294901760, %v457_v22  ;;  %v2306_v22 = vand.u32 4294901760, %v1653_v24 }
  0x20   :  { %150 = vmatpush.msra.mxu1 %v149_v40  ;;  %227 = vmatpush.msra.mxu2 %v1550_v35  ;;  %v452_v40 = vand.u32 4294901760, %v451_v21  ;;  %v179_v21 = vand.u32 4294901760, %v178_v2  ;;  %v480_v28 = vand.u32 4294901760, %v1671_v53  ;;  %v385_v2 = vld [vmem:[%s2268_s3] sm:$0xff] }
  0x21   :  { %73 = vmatpush.msra.mxu0 %v1532_v8  ;;  %269 = vmatpush.msra.mxu3 %v1532_v8  ;;  %v1686_v8 = vsub.f32 %v389_v37, %v1655_v23  ;;  %v1698_v37 = vsub.f32 %v388_v29, %v1673_v26 }
  0x22   :  { %156 = vmatpush.msra.mxu1 %v155_v55  ;;  %230 = vmatpush.msra.mxu2 %v1573_v49  ;;  %v386_v55 = vld [vmem:[%s2268_s3 + $0x8] sm:$0xff] }
  0x23   :  { %75 = vmatpush.msra.mxu0 %v1552_v36  ;;  %271 = vmatpush.msra.mxu3 %v1552_v36  ;;  %v486_v29 = vand.u32 4294901760, %v1686_v8 }
  0x24   :  { %162 = vmatpush.msra.mxu1 %v161_v31  ;;  %233 = vmatpush.msra.mxu2 %v1588_v60  ;;  %v2304_v31 = vand.u32 4294901760, %v1627_v54  ;;  %v1700_v60 = vand.u32 4294901760, %v386_v55 }
  0x25   :  { %282 = vmatpush.msrb.mxu0 %v2303_v48  ;;  %447 = vmatpush.msrb.mxu3 %v446_v0  ;;  %v475_v0 = vsub.f32 %v1653_v24, %v2306_v22  ;;  %v1713_v48 = vsub.f32 %v387_v13, %v1688_v63  ;;  %v26_v13 = vld [vmem:[%s2269_s0] sm:$0xf] }
  0x26   :  { %406 = vmatpush.msrb.mxu2 %v1528_v7  ;;  %v469_v36 = vsub.f32 %v1627_v54, %v2304_v31  ;;  %168 = vmatpush.msra.mxu1 %v167_v34  ;;  %v464_v34 = vand.u32 4294901760, %v463_v38  ;;  %v1722_v38 = vand.u32 4294901760, %v385_v2 }
  0x27   :  { %286 = vmatpush.msrb.mxu0 %v2305_v14  ;;  %453 = vmatpush.msrb.mxu3 %v452_v40  ;;  %v492_v40 = vand.u32 4294901760, %v1698_v37  ;;  %v1725_v14 = vsub.f32 %v386_v55, %v1700_v60  ;;  %v498_v55 = vand.u32 4294901760, %v1713_v48 }
  0x28   :  { %408 = vmatpush.msrb.mxu2 %v1534_v12  ;;  %174 = vmatpush.msra.mxu1 %v173_v41  ;;  %v470_v31 = vand.u32 4294901760, %v469_v36  ;;  %v481_v41 = vsub.f32 %v1671_v53, %v480_v28  ;;  %v476_v36 = vand.u32 4294901760, %v475_v0  ;;  %v1749_v0 = vsub.f32 %v385_v2, %v1722_v38 }
  0x29   :  { %290 = vmatpush.msrb.mxu0 %v2307_v15  ;;  %459 = vmatpush.msrb.mxu3 %v458_v39  ;;  %v1740_v39 = vand.u32 4294901760, %v26_v13  ;;  %v504_v22 = vand.u32 4294901760, %v1725_v14  ;;  %v499_v15 = vsub.f32 %v1713_v48, %v498_v55 }
  0x2a   :  { %410 = vmatpush.msrb.mxu2 %v1565_v43  ;;  %180 = vmatpush.msra.mxu1 %v179_v21  ;;  %v487_v21 = vsub.f32 %v1686_v8, %v486_v29  ;;  %v482_v18 = vand.u32 4294901760, %v481_v41  ;;  %v510_v41 = vand.u32 4294901760, %v1749_v0 }
  0x2b   :  { %294 = vmatpush.msrb.mxu0 %v2308_v16  ;;  %465 = vmatpush.msrb.mxu3 %v464_v34  ;;  %v493_v34 = vsub.f32 %v1698_v37, %v492_v40  ;;  %v1761_v2 = vsub.f32 %v26_v13, %v1740_v39  ;;  %v500_v13 = vand.u32 4294901760, %v499_v15  ;;  %v27_v16 = vld [vmem:[%s2270_s1] sm:$0xf]  ;;  %v2324_v15 = vld [vmem:[#allocation3_spill] sm:$0xff] }
  0x2c   :  { %349 = vmatpush.msrb.mxu1 %v1364_v3  ;;  %412 = vmatpush.msrb.mxu2 %v1583_v56  ;;  %v2309_v3 = vand.u32 4294901760, %v1408_v19  ;;  %v488_v19 = vand.u32 4294901760, %v487_v21  ;;  %v399_v21 = vsel %vm397_vm0, %v27_v16, 0 }
  0x2d   :  { %471 = vmatpush.msrb.mxu3 %v470_v31  ;;  %v494_v31 = vand.u32 4294901760, %v493_v34  ;;  %236 = vmatmul.f32.vlgmr.msra.gmra.mxu2 %v1761_v2  ;;  %v2322_v34 = vld [vmem:[#allocation2_spill] sm:$0xff] }
  0x2e   :  { %351 = vmatpush.msrb.mxu1 %v1366_v4  ;;  %414 = vmatpush.msrb.mxu2 %v1591_v62  ;;  %v2310_v4 = vand.u32 4294901760, %v1421_v25  ;;  %v505_v25 = vsub.f32 %v1725_v14, %v504_v22 }
  0x2f   :  { %298 = vmatpush.msrb.mxu0 %v2309_v3  ;;  %477 = vmatpush.msrb.mxu3 %v476_v36  ;;  %v511_v36 = vsub.f32 %v1749_v0, %v510_v41  ;;  %v2315_v3 = vand.u32 4294901760, %v1502_v57  ;;  %v2317_v57 = vand.u32 4294901760, %v1544_v30  ;;  %v2320_v30 = vld [vmem:[#allocation5_spill] sm:$0xff] }
  0x30   :  { %353 = vmatpush.msrb.mxu1 %v1368_v5  ;;  %416 = vmatpush.msrb.mxu2 %v1618_v47  ;;  %v2311_v5 = vand.u32 4294901760, %v1426_v27  ;;  %v1776_v27 = vand.u32 4294901760, %v1761_v2 }
  0x31   :  { %302 = vmatpush.msrb.mxu0 %v2310_v4  ;;  %483 = vmatpush.msrb.mxu3 %v482_v18  ;;  %v512_v18 = vand.u32 4294901760, %v511_v36 }
  0x32   :  { %355 = vmatpush.msrb.mxu1 %v1379_v9  ;;  %418 = vmatpush.msrb.mxu2 %v1637_v61  ;;  %v2312_v9 = vand.u32 4294901760, %v1444_v33  ;;  %v506_v33 = vand.u32 4294901760, %v505_v25  ;;  %v2325_v25 = vand.u32 4294901760, %v1576_v50 }
  0x33   :  { %306 = vmatpush.msrb.mxu0 %v2311_v5  ;;  %489 = vmatpush.msrb.mxu3 %v488_v19  ;;  %v2323_v19 = vand.u32 4294901760, %v1563_v42  ;;  %v703_v5 = vld [vmem:[%s2271_s4 + $0x68] sm:$0xff] }
  0x34   :  { %357 = vmatpush.msrb.mxu1 %v1381_v10  ;;  %420 = vmatpush.msrb.mxu2 %v1655_v23  ;;  %v2313_v10 = vand.u32 4294901760, %v1468_v44  ;;  %v79_v44 = vsub.f32 %v1761_v2, %v1776_v27 }
  0x35   :  { %310 = vmatpush.msrb.mxu0 %v2312_v9  ;;  %495 = vmatpush.msrb.mxu3 %v494_v31 }
  0x36   :  { %359 = vmatpush.msrb.mxu1 %v1383_v11  ;;  %422 = vmatpush.msrb.mxu2 %v1673_v26  ;;  %v2314_v11 = vand.u32 4294901760, %v1485_v51  ;;  %v1805_v51 = vand.u32 4294901760, %v79_v44  ;;  %v2328_v44 = vand.u32 4294901760, %v1616_v58 }
  0x37   :  { %314 = vmatpush.msrb.mxu0 %v2313_v10  ;;  %501 = vmatpush.msrb.mxu3 %v500_v13  ;;  %v2326_v13 = vld [vmem:[#allocation4_spill] sm:$0xff]  ;;  %v1868_v10 = vand.u32 4294901760, %v703_v5 }
  0x38   :  { %361 = vmatpush.msrb.mxu1 %v1402_v17  ;;  %424 = vmatpush.msrb.mxu2 %v1688_v63  ;;  %v1798_v17 = vand.u32 4294901760, %v399_v21 }
  0x39   :  { %318 = vmatpush.msrb.mxu0 %v2314_v11  ;;  %507 = vmatpush.msrb.mxu3 %v506_v33  ;;  %v2327_v33 = vand.u32 4294901760, %v1602_v6 }
  0x3a   :  { %363 = vmatpush.msrb.mxu1 %v1410_v20  ;;  %426 = vmatpush.msrb.mxu2 %v1700_v60  ;;  %v2316_v20 = vand.u32 4294901760, %v1522_v1 }
  0x3b   :  { %322 = vmatpush.msrb.mxu0 %v2315_v3  ;;  %513 = vmatpush.msrb.mxu3 %v512_v18  ;;  %v699_v18 = vld [vmem:[%s2271_s4 + $0x48] sm:$0xff] }
  0x3c   :  { %365 = vmatpush.msrb.mxu1 %v1440_v32  ;;  %428 = vmatpush.msrb.mxu2 %v1722_v38  ;;  %v1812_v32 = vsub.f32 %v399_v21, %v1798_v17  ;;  %v700_v21 = vld [vmem:[%s2271_s4 + $0x50] sm:$0xff] }
  0x3d   :  { %326 = vmatpush.msrb.mxu0 %v2316_v20  ;;  %275 = vmatmul.f32.vlgmr.msra.gmra.mxu3 %v1776_v27 }
  0x3e   :  { %525 = vmatpush.msra.mxu2 %v1563_v42  ;;  %367 = vmatpush.msrb.mxu1 %v1470_v45  ;;  %v2318_v45 = vand.u32 4294901760, %v1550_v35  ;;  %v431_v1 = vand.u32 4294901760, %v1812_v32  ;;  %v2321_v35 = vand.u32 4294901760, %v2320_v30  ;;  %v702_v42 = vld [vmem:[%s2271_s4 + $0x60] sm:$0xff] }
  0x3f   :  { %330 = vmatpush.msrb.mxu0 %v2317_v57  ;;  %570 = vmatpush.msra.mxu3 %v1528_v7  ;;  %v1881_v11 = vand.u32 4294901760, %v702_v42  ;;  %v1907_v57 = vand.u32 4294901760, %v700_v21 }
  0x40   :  { %528 = vmatpush.msra.mxu2 %v1576_v50  ;;  %369 = vmatpush.msrb.mxu1 %v1472_v46  ;;  %v2319_v46 = vand.u32 4294901760, %v1573_v49  ;;  %v432_v49 = vsub.f32 %v1812_v32, %v431_v1  ;;  %v701_v50 = vld [vmem:[%s2271_s4 + $0x58] sm:$0xff] }
  0x41   :  { %81 = vmatmul.f32.vlgmr.msra.gmra.mxu0 %v1805_v51  ;;  %572 = vmatpush.msra.mxu3 %v1534_v12  ;;  %v1894_v3 = vand.u32 4294901760, %v701_v50  ;;  %v1905_v20 = vsub.f32 %v702_v42, %v1881_v11 }
  0x42   :  { %531 = vmatpush.msra.mxu2 %v1602_v6  ;;  %334 = vmatpush.msrb.mxu0 %v2318_v45  ;;  %v433_v9 = vand.u32 4294901760, %v432_v49  ;;  %v698_v45 = vld [vmem:[%s2271_s4 + $0x40] sm:$0xff] }
  0x43   :  { %371 = vmatpush.msrb.mxu1 %v1487_v52  ;;  %574 = vmatpush.msra.mxu3 %v1565_v43  ;;  %v705_v52 = vld [vmem:[%s2271_s4 + $0x78] sm:$0xff] }
  0x44   :  { %534 = vmatpush.msra.mxu2 %v1616_v58  ;;  %182 = vmatmul.f32.vlgmr.msra.gmra.mxu1 %v1740_v39  ;;  %v1845_v4 = vand.u32 4294901760, %v705_v52 }
  0x45   :  { %338 = vmatpush.msrb.mxu0 %v2319_v46  ;;  %373 = vmatpush.msrb.mxu1 %v1505_v59  ;;  %v704_v59 = vld [vmem:[%s2271_s4 + $0x70] sm:$0xff]  ;;  %v2329_v46 = vand.u32 4294901760, %v1627_v54 }
  0x46   :  { %537 = vmatpush.msra.mxu2 %v1627_v54  ;;  %576 = vmatpush.msra.mxu3 %v1583_v56  ;;  %v1855_v31 = vand.u32 4294901760, %v704_v59  ;;  %v1866_v16 = vsub.f32 %v705_v52, %v1845_v4  ;;  %v2330_v54 = vand.u32 4294901760, %v1653_v24 }
  0x47   :  { %342 = vmatpush.msrb.mxu0 %v2321_v35  ;;  %375 = vmatpush.msrb.mxu1 %v2322_v34  ;;  %v1924_v35 = vsub.f32 %v701_v50, %v1894_v3  ;;  %v697_v34 = vld [vmem:[%s2271_s4 + $0x38] sm:$0xff] }
  0x48   :  { %540 = vmatpush.msra.mxu2 %v1653_v24  ;;  %578 = vmatpush.msra.mxu3 %v1591_v62  ;;  %v1879_v36 = vsub.f32 %v704_v59, %v1855_v31  ;;  %v753_v6 = vand.u32 4294901760, %v1866_v16  ;;  %v771_v59 = vand.u32 4294901760, %v1905_v20  ;;  %v1941_v24 = vsub.f32 %v700_v21, %v1907_v57 }
  0x49   :  { %607 = vmatpush.msra.mxu0 %v2323_v19  ;;  %377 = vmatpush.msrb.mxu1 %v2324_v15  ;;  %v696_v19 = vld [vmem:[%s2271_s4 + $0x30] sm:$0xff] }
  0x4a   :  { %344 = vmatmul.f32.vlgmr.msrb.gmra.mxu0 %v1740_v39  ;;  %543 = vmatpush.msra.mxu2 %v1671_v53  ;;  %v759_v58 = vand.u32 4294901760, %v1879_v36  ;;  %v754_v52 = vsub.f32 %v1866_v16, %v753_v6  ;;  %v1958_v53 = vand.u32 4294901760, %v697_v34 }
  0x4b   :  { %580 = vmatpush.msra.mxu3 %v1618_v47  ;;  %611 = vmatpush.msra.mxu0 %v2325_v25  ;;  %v695_v25 = vld [vmem:[%s2271_s4 + $0x28] sm:$0xff] }
  0x4c   :  { %379 = vmatpush.msrb.mxu1 %v2326_v13  ;;  %546 = vmatpush.msra.mxu2 %v1686_v8  ;;  %v760_v49 = vsub.f32 %v1879_v36, %v759_v58  ;;  %v755_v15 = vand.u32 4294901760, %v754_v52  ;;  %v772_v8 = vsub.f32 %v1905_v20, %v771_v59  ;;  %v1990_v50 = vsub.f32 %v697_v34, %v1958_v53 }
  0x4d   :  { %381 = vmatmul.f32.vlgmr.msrb.gmra.mxu1 %v1740_v39  ;;  %582 = vmatpush.msra.mxu3 %v1637_v61 }
  0x4e   :  { %615 = vmatpush.msra.mxu0 %v2327_v33  ;;  %662 = vmatpush.msra.mxu1 %v1528_v7  ;;  %v1892_v7 = vsub.f32 %v703_v5, %v1868_v10  ;;  %v773_v33 = vand.u32 4294901760, %v772_v8 }
  0x4f   :  { %434 = vmatmul.f32.vlgmr.msrb.gmra.mxu2 %v433_v9  ;;  %584 = vmatpush.msra.mxu3 %v1655_v23  ;;  %v761_v9 = vand.u32 4294901760, %v760_v49 }
  0x50   :  { %549 = vmatpush.msra.mxu2 %v1698_v37  ;;  %619 = vmatpush.msra.mxu0 %v2328_v44  ;;  %v765_v30 = vand.u32 4294901760, %v1892_v7  ;;  %v1992_v37 = vand.u32 4294901760, %v695_v25 }
  0x51   :  { %664 = vmatpush.msra.mxu1 %v1534_v12  ;;  %515 = vmatmul.f32.vlgmr.msrb.gmra.mxu3 %v1798_v17  ;;  %v1915_v12 = vand.u32 4294901760, %v699_v18 }
  0x52   :  { %552 = vmatpush.msra.mxu2 %v1713_v48  ;;  %586 = vmatpush.msra.mxu3 %v1673_v26  ;;  %v766_v5 = vsub.f32 %v1892_v7, %v765_v30 }
  0x53   :  { %623 = vmatpush.msra.mxu0 %v2329_v46  ;;  %666 = vmatpush.msra.mxu1 %v1565_v43  ;;  %v1929_v43 = vand.u32 4294901760, %v698_v45  ;;  %v2022_v46 = vsub.f32 %v695_v25, %v1992_v37 }
  0x54   :  { %555 = vmatpush.msra.mxu2 %v1725_v14  ;;  %588 = vmatpush.msra.mxu3 %v1688_v63 }
  0x55   :  { %627 = vmatpush.msra.mxu0 %v2330_v54  ;;  %668 = vmatpush.msra.mxu1 %v1583_v56  ;;  %v1947_v56 = vsub.f32 %v699_v18, %v1915_v12 }
  0x56   :  { %558 = vmatpush.msra.mxu2 %v1749_v0  ;;  %590 = vmatpush.msra.mxu3 %v1700_v60 }
  0x57   :  { %631 = vmatpush.msra.mxu0 %v480_v28  ;;  %670 = vmatpush.msra.mxu1 %v1591_v62  ;;  %v777_v28 = vand.u32 4294901760, %v1924_v35  ;;  %v1964_v62 = vsub.f32 %v698_v45, %v1929_v43  ;;  %v789_v42 = vand.u32 4294901760, %v1947_v56  ;;  %v801_v45 = vand.u32 4294901760, %v1990_v50 }
  0x58   :  { %561 = vmatmul.f32.vlgmr.msra.gmra.mxu2 %v1812_v32  ;;  %592 = vmatpush.msra.mxu3 %v1722_v38  ;;  %v694_v32 = vld [vmem:[%s2271_s4 + $0x20] sm:$0xff] }
  0x59   :  { %635 = vmatpush.msra.mxu0 %v486_v29  ;;  %672 = vmatpush.msra.mxu1 %v1618_v47  ;;  %v783_v29 = vand.u32 4294901760, %v1941_v24  ;;  %v1976_v47 = vand.u32 4294901760, %v696_v19  ;;  %v778_v13 = vsub.f32 %v1924_v35, %v777_v28  ;;  %v2008_v48 = vand.u32 4294901760, %v694_v32 }
  0x5a   :  { %596 = vmatmul.f32.vlgmr.msra.gmra.mxu3 %v431_v1  ;;  %711 = vmatpush.msrb.mxu2 %v1845_v4  ;;  %v767_v1 = vand.u32 4294901760, %v766_v5  ;;  %v802_v49 = vsub.f32 %v1990_v50, %v801_v45 }
  0x5b   :  { %639 = vmatpush.msra.mxu0 %v492_v40  ;;  %674 = vmatpush.msra.mxu1 %v1637_v61  ;;  %v795_v61 = vand.u32 4294901760, %v1964_v62  ;;  %v693_v40 = vld [vmem:[%s2271_s4 + $0x18] sm:$0xff]  ;;  %v784_v21 = vsub.f32 %v1941_v24, %v783_v29  ;;  %v2006_v44 = vsub.f32 %v696_v19, %v1976_v47  ;;  %v779_v18 = vand.u32 4294901760, %v778_v13 }
  0x5c   :  { %756 = vmatpush.msrb.mxu3 %v755_v15  ;;  %713 = vmatpush.msrb.mxu2 %v1855_v31  ;;  %v2024_v14 = vand.u32 4294901760, %v693_v40  ;;  %v2038_v34 = vsub.f32 %v694_v32, %v2008_v48  ;;  %v813_v19 = vand.u32 4294901760, %v2022_v46 }
  0x5d   :  { %643 = vmatpush.msra.mxu0 %v498_v55  ;;  %676 = vmatpush.msra.mxu1 %v1655_v23  ;;  %v790_v23 = vsub.f32 %v1947_v56, %v789_v42  ;;  %v692_v55 = vld [vmem:[%s2271_s4 + $0x10] sm:$0xff]  ;;  %v785_v52 = vand.u32 4294901760, %v784_v21  ;;  %v807_v54 = vand.u32 4294901760, %v2006_v44 }
  0x5e   :  { %762 = vmatpush.msrb.mxu3 %v761_v9  ;;  %715 = vmatpush.msrb.mxu2 %v1868_v10  ;;  %v2040_v0 = vand.u32 4294901760, %v692_v55  ;;  %v2052_v15 = vsub.f32 %v693_v40, %v2024_v14  ;;  %v819_v9 = vand.u32 4294901760, %v2038_v34 }
  0x5f   :  { %647 = vmatpush.msra.mxu0 %v504_v22  ;;  %678 = vmatpush.msra.mxu1 %v1673_v26  ;;  %v796_v26 = vsub.f32 %v1964_v62, %v795_v61  ;;  %v691_v22 = vld [vmem:[%s2271_s4 + $0x8] sm:$0xff]  ;;  %v808_v25 = vsub.f32 %v2006_v44, %v807_v54 }
  0x60   :  { %768 = vmatpush.msrb.mxu3 %v767_v1  ;;  %717 = vmatpush.msrb.mxu2 %v1881_v11  ;;  %v2054_v5 = vand.u32 4294901760, %v691_v22  ;;  %v2065_v8 = vsub.f32 %v692_v55, %v2040_v0  ;;  %v825_v1 = vand.u32 4294901760, %v2052_v15 }
  0x61   :  { %651 = vmatpush.msra.mxu0 %v510_v41  ;;  %680 = vmatpush.msra.mxu1 %v1688_v63  ;;  %v791_v63 = vand.u32 4294901760, %v790_v23  ;;  %v690_v41 = vld [vmem:[%s2271_s4] sm:$0xff]  ;;  %v809_v40 = vand.u32 4294901760, %v808_v25 }
  0x62   :  { %653 = vmatmul.f32.vlgmr.msra.gmra.mxu0 %v1798_v17  ;;  %774 = vmatpush.msrb.mxu3 %v773_v33  ;;  %v2067_v32 = vand.u32 4294901760, %v690_v41  ;;  %v2076_v13 = vsub.f32 %v691_v22, %v2054_v5  ;;  %v820_v33 = vsub.f32 %v2038_v34, %v819_v9  ;;  %v831_v21 = vand.u32 4294901760, %v2065_v8 }
  0x63   :  { %682 = vmatpush.msra.mxu1 %v1700_v60  ;;  %719 = vmatpush.msrb.mxu2 %v1894_v3  ;;  %v797_v60 = vand.u32 4294901760, %v796_v26 }
  0x64   :  { %780 = vmatpush.msrb.mxu3 %v779_v18  ;;  %854 = vmatpush.msrb.mxu0 %v1866_v16  ;;  %v2086_v23 = vsub.f32 %v690_v41, %v2067_v32  ;;  %v826_v18 = vsub.f32 %v2052_v15, %v825_v1  ;;  %v837_v26 = vand.u32 4294901760, %v2076_v13  ;;  %v821_v22 = vand.u32 4294901760, %v820_v33 }
  0x65   :  { %684 = vmatpush.msra.mxu1 %v1722_v38  ;;  %721 = vmatpush.msrb.mxu2 %v1907_v57  ;;  %v803_v38 = vand.u32 4294901760, %v802_v49 }
  0x66   :  { %686 = vmatmul.f32.vlgmr.msra.gmra.mxu1 %v1798_v17  ;;  %786 = vmatpush.msrb.mxu3 %v785_v52  ;;  %v814_v17 = vsub.f32 %v2022_v46, %v813_v19  ;;  %v832_v52 = vsub.f32 %v2065_v8, %v831_v21  ;;  %v827_v41 = vand.u32 4294901760, %v826_v18  ;;  %v838_v49 = vsub.f32 %v2076_v13, %v837_v26 }
  0x67   :  { %723 = vmatpush.msrb.mxu2 %v1915_v12  ;;  %907 = vmatpush.msrb.mxu1 %v1845_v4 }
  0x68   :  { %792 = vmatpush.msrb.mxu3 %v791_v63  ;;  %857 = vmatpush.msrb.mxu0 %v1879_v36  ;;  %v815_v55 = vand.u32 4294901760, %v814_v17  ;;  %v843_v63 = vand.u32 4294901760, %v2086_v23 }
  0x69   :  { %725 = vmatpush.msrb.mxu2 %v1929_v43  ;;  %909 = vmatpush.msrb.mxu1 %v1855_v31 }
  0x6a   :  { %798 = vmatpush.msrb.mxu3 %v797_v60  ;;  %860 = vmatpush.msrb.mxu0 %v1892_v7  ;;  %v833_v60 = vand.u32 4294901760, %v832_v52  ;;  %v844_v25 = vsub.f32 %v2086_v23, %v843_v63 }
  0x6b   :  { %727 = vmatpush.msrb.mxu2 %v1958_v53  ;;  %911 = vmatpush.msrb.mxu1 %v1868_v10 }
  0x6c   :  { %804 = vmatpush.msrb.mxu3 %v803_v38  ;;  %863 = vmatpush.msrb.mxu0 %v1905_v20  ;;  %v839_v38 = vand.u32 4294901760, %v838_v49  ;;  %v845_v17 = vand.u32 4294901760, %v844_v25  ;;  %v1055_v20 = vld [vmem:[%s2273_s5 + $0x18] sm:$0xff] }
  0x6d   :  { %729 = vmatpush.msrb.mxu2 %v1976_v47  ;;  %913 = vmatpush.msrb.mxu1 %v1881_v11 }
  0x6e   :  { %810 = vmatpush.msrb.mxu3 %v809_v40  ;;  %866 = vmatpush.msrb.mxu0 %v1924_v35 }
  0x6f   :  { %731 = vmatpush.msrb.mxu2 %v1992_v37  ;;  %915 = vmatpush.msrb.mxu1 %v1894_v3 }
  0x70   :  { %816 = vmatpush.msrb.mxu3 %v815_v55  ;;  %869 = vmatpush.msrb.mxu0 %v1941_v24 }
  0x71   :  { %733 = vmatpush.msrb.mxu2 %v2008_v48  ;;  %917 = vmatpush.msrb.mxu1 %v1907_v57 }
  0x72   :  { %822 = vmatpush.msrb.mxu3 %v821_v22  ;;  %872 = vmatpush.msrb.mxu0 %v1947_v56 }
  0x73   :  { %735 = vmatpush.msrb.mxu2 %v2024_v14  ;;  %919 = vmatpush.msrb.mxu1 %v1915_v12 }
  0x74   :  { %828 = vmatpush.msrb.mxu3 %v827_v41  ;;  %875 = vmatpush.msrb.mxu0 %v1964_v62 }
  0x75   :  { %737 = vmatpush.msrb.mxu2 %v2040_v0  ;;  %921 = vmatpush.msrb.mxu1 %v1929_v43 }
  0x76   :  { %834 = vmatpush.msrb.mxu3 %v833_v60  ;;  %878 = vmatpush.msrb.mxu0 %v1990_v50 }
  0x77   :  { %739 = vmatpush.msrb.mxu2 %v2054_v5  ;;  %923 = vmatpush.msrb.mxu1 %v1958_v53 }
  0x78   :  { %840 = vmatpush.msrb.mxu3 %v839_v38  ;;  %881 = vmatpush.msrb.mxu0 %v2006_v44  ;;  %v1052_v44 = vld [vmem:[%s2273_s5] sm:$0xff] }
  0x79   :  { %741 = vmatpush.msrb.mxu2 %v2067_v32  ;;  %925 = vmatpush.msrb.mxu1 %v1976_v47 }
  0x7a   :  { %846 = vmatpush.msrb.mxu3 %v845_v17  ;;  %884 = vmatpush.msrb.mxu0 %v2022_v46 }
  0x7b   :  { %948 = vmatpush.msra.mxu2 %v753_v6  ;;  %927 = vmatpush.msrb.mxu1 %v1992_v37 }
  0x7c   :  { %1015 = vmatpush.msra.mxu3 %v1845_v4  ;;  %887 = vmatpush.msrb.mxu0 %v2038_v34 }
  0x7d   :  { %952 = vmatpush.msra.mxu2 %v759_v58  ;;  %929 = vmatpush.msrb.mxu1 %v2008_v48 }
  0x7e   :  { %1017 = vmatpush.msra.mxu3 %v1855_v31  ;;  %890 = vmatpush.msrb.mxu0 %v2052_v15 }
  0x7f   :  { %956 = vmatpush.msra.mxu2 %v765_v30  ;;  %931 = vmatpush.msrb.mxu1 %v2024_v14 }
  0x80   :  { %1019 = vmatpush.msra.mxu3 %v1868_v10  ;;  %893 = vmatpush.msrb.mxu0 %v2065_v8 }
  0x81   :  { %960 = vmatpush.msra.mxu2 %v771_v59  ;;  %933 = vmatpush.msrb.mxu1 %v2040_v0  ;;  %v1054_v59 = vld [vmem:[%s2273_s5 + $0x10] sm:$0xff] }
  0x82   :  { %1021 = vmatpush.msra.mxu3 %v1881_v11  ;;  %896 = vmatpush.msrb.mxu0 %v2076_v13  ;;  %v1056_v11 = vld [vmem:[%s2273_s5 + $0x20] sm:$0xff] }
  0x83   :  { %964 = vmatpush.msra.mxu2 %v777_v28  ;;  %935 = vmatpush.msrb.mxu1 %v2054_v5  ;;  %v2226_v58 = vand.u32 4294901760, %v1056_v11 }
  0x84   :  { %1023 = vmatpush.msra.mxu3 %v1894_v3  ;;  %747 = vmatmul.f32.vlgmr.msrb.gmra.mxu2 %v1805_v51  ;;  %v1058_v51 = vld [vmem:[%s2273_s5 + $0x30] sm:$0xff] }
  0x85   :  { %968 = vmatpush.msra.mxu2 %v783_v29  ;;  %937 = vmatpush.msrb.mxu1 %v2067_v32  ;;  %v2203_v31 = vand.u32 4294901760, %v1058_v51  ;;  %v1124_v35 = vsub.f32 %v1056_v11, %v2226_v58  ;;  %v1053_v29 = vld [vmem:[%s2273_s5 + $0x8] sm:$0xff] }
  0x86   :  { %1025 = vmatpush.msra.mxu3 %v1907_v57  ;;  %899 = vmatpush.msrb.mxu0 %v2086_v23 }
  0x87   :  { %972 = vmatpush.msra.mxu2 %v789_v42  ;;  %848 = vmatmul.f32.vlgmr.msrb.gmra.mxu3 %v1740_v39  ;;  %v2212_v10 = vsub.f32 %v1058_v51, %v2203_v31  ;;  %v1125_v28 = vand.u32 4294901760, %v1124_v35 }
  0x88   :  { %1027 = vmatpush.msra.mxu3 %v1915_v12  ;;  %941 = vmatmul.f32.vlgmr.msrb.gmra.mxu1 %v1776_v27 }
  0x89   :  { %976 = vmatpush.msra.mxu2 %v795_v61  ;;  %902 = vmatmul.f32.vlgmr.msrb.gmra.mxu0 %v1761_v2  ;;  %v1059_v2 = vld [vmem:[%s2273_s5 + $0x38] sm:$0xff]  ;;  %v1113_v7 = vand.u32 4294901760, %v2212_v10  ;;  %v1126_v42 = vsub.f32 %v1124_v35, %v1125_v28 }
  0x8a   :  { %1029 = vmatpush.msra.mxu3 %v1929_v43  ;;  %v2195_v27 = vand.u32 4294901760, %v1059_v2  ;;  %v2237_v43 = vand.u32 4294901760, %v1055_v20 }
  0x8b   :  { %980 = vmatpush.msra.mxu2 %v801_v45  ;;  %v1114_v12 = vsub.f32 %v2212_v10, %v1113_v7 }
  0x8c   :  { %1031 = vmatpush.msra.mxu3 %v1958_v53  ;;  %v2201_v4 = vsub.f32 %v1059_v2, %v2195_v27  ;;  %1073 = vmatpush.msra.mxu0 %v2195_v27  ;;  %v1082_v53 = vand.u32 4294901760, %v1054_v59  ;;  %v1130_v62 = vsub.f32 %v1055_v20, %v2237_v43 }
  0x8d   :  { %984 = vmatpush.msra.mxu2 %v807_v54  ;;  %v1115_v24 = vand.u32 4294901760, %v1114_v12 }
  0x8e   :  { %1033 = vmatpush.msra.mxu3 %v1976_v47  ;;  %v1107_v16 = vand.u32 4294901760, %v2201_v4  ;;  %1075 = vmatpush.msra.mxu0 %v2203_v31  ;;  %v1136_v50 = vsub.f32 %v1054_v59, %v1082_v53  ;;  %v1131_v61 = vand.u32 4294901760, %v1130_v62 }
  0x8f   :  { %988 = vmatpush.msra.mxu2 %v813_v19 }
  0x90   :  { %1035 = vmatpush.msra.mxu3 %v1992_v37  ;;  %v1108_v6 = vsub.f32 %v2201_v4, %v1107_v16  ;;  %v1084_v37 = vand.u32 4294901760, %v1053_v29  ;;  %v1137_v45 = vand.u32 4294901760, %v1136_v50  ;;  %v1132_v54 = vsub.f32 %v1130_v62, %v1131_v61 }
  0x91   :  { %992 = vmatpush.msra.mxu2 %v819_v9 }
  0x92   :  { %1037 = vmatpush.msra.mxu3 %v2008_v48  ;;  %v1109_v57 = vand.u32 4294901760, %v1108_v6  ;;  %v1127_v48 = vand.u32 4294901760, %v1126_v42  ;;  %v1142_v46 = vsub.f32 %v1053_v29, %v1084_v37  ;;  %v1138_v34 = vsub.f32 %v1136_v50, %v1137_v45 }
  0x93   :  { %996 = vmatpush.msra.mxu2 %v825_v1  ;;  %v1133_v15 = vand.u32 4294901760, %v1132_v54 }
  0x94   :  { %1039 = vmatpush.msra.mxu3 %v2024_v14  ;;  %1110 = vmatpush.msra.mxu1 %v1109_v57  ;;  %v1086_v14 = vand.u32 4294901760, %v1052_v44 }
  0x95   :  { %1000 = vmatpush.msra.mxu2 %v831_v21 }
  0x96   :  { %1041 = vmatpush.msra.mxu3 %v2040_v0  ;;  %1116 = vmatpush.msra.mxu1 %v1115_v24  ;;  %v1143_v0 = vand.u32 4294901760, %v1142_v46  ;;  %v1148_v19 = vsub.f32 %v1052_v44, %v1086_v14  ;;  %v1310_v24 = vld [vmem:[%s2272_s6] ss:$0 sm:$0xff] }
  0x97   :  { %1004 = vmatpush.msra.mxu2 %v837_v26 }
  0x98   :  { %1043 = vmatpush.msra.mxu3 %v2054_v5  ;;  %v1139_v5 = vand.u32 4294901760, %v1138_v34  ;;  %v1144_v9 = vsub.f32 %v1142_v46, %v1143_v0  ;;  %v1149_v8 = vand.u32 4294901760, %v1148_v19 }
  0x99   :  { %1008 = vmatpush.msra.mxu2 %v843_v63 }
  0x9a   :  { %1045 = vmatpush.msra.mxu3 %v2067_v32  ;;  %1010 = vmatmul.f32.vlgmr.msra.gmra.mxu2 %v1740_v39  ;;  %v1145_v32 = vand.u32 4294901760, %v1144_v9  ;;  %v1150_v1 = vsub.f32 %v1148_v19, %v1149_v8 }
  0x9b   :  { %1047 = vmatmul.f32.vlgmr.msra.gmra.mxu3 %v1740_v39  ;;  %v1057_v39 = vld [vmem:[%s2273_s5 + $0x28] sm:$0xff]  ;;  %1238 = vmatpush.msrb.mxu2 %v1107_v16 }
  0x9c   :  { %1281 = vmatpush.msrb.mxu3 %v2195_v27  ;;  %v2214_v36 = vand.u32 4294901760, %v1057_v39  ;;  %v1151_v13 = vand.u32 4294901760, %v1150_v1 }
  0x9d   :  { %1242 = vmatpush.msrb.mxu2 %v1113_v7 }
  0x9e   :  { %1283 = vmatpush.msrb.mxu3 %v2203_v31  ;;  %v2224_v3 = vsub.f32 %v1057_v39, %v2214_v36  ;;  %1077 = vmatpush.msra.mxu0 %v2214_v36 }
  0xa0   :  { %1285 = vmatpush.msrb.mxu3 %v2214_v36  ;;  %v1119_v30 = vand.u32 4294901760, %v2224_v3  ;;  %1079 = vmatpush.msra.mxu0 %v2226_v58 }
  0xa2   :  { %1287 = vmatpush.msrb.mxu3 %v2226_v58  ;;  %v1120_v56 = vsub.f32 %v2224_v3, %v1119_v30  ;;  %1246 = vmatpush.msrb.mxu2 %v1119_v30 }
  0xa3   :  { %1081 = vmatpush.msra.mxu0 %v2237_v43 }
  0xa4   :  { %1289 = vmatpush.msrb.mxu3 %v2237_v43  ;;  %v1121_v47 = vand.u32 4294901760, %v1120_v56  ;;  %1250 = vmatpush.msrb.mxu2 %v1125_v28 }
  0xa5   :  { %1083 = vmatpush.msra.mxu0 %v1082_v53 }
  0xa6   :  { %1291 = vmatpush.msrb.mxu3 %v1082_v53  ;;  %1122 = vmatpush.msra.mxu1 %v1121_v47 }
  0xa7   :  { %1254 = vmatpush.msrb.mxu2 %v1131_v61  ;;  %1085 = vmatpush.msra.mxu0 %v1084_v37 }
  0xa8   :  { %1293 = vmatpush.msrb.mxu3 %v1084_v37  ;;  %1128 = vmatpush.msra.mxu1 %v1127_v48 }
  0xa9   :  { %1258 = vmatpush.msrb.mxu2 %v1137_v45  ;;  %1087 = vmatpush.msra.mxu0 %v1086_v14 }
  0xaa   :  { %1295 = vmatpush.msrb.mxu3 %v1086_v14  ;;  %1134 = vmatpush.msra.mxu1 %v1133_v15 }
  0xab   :  { %1262 = vmatpush.msrb.mxu2 %v1143_v0  ;;  %1168 = vmatpush.msrb.mxu0 %v2201_v4 }
  0xac   :  { %1140 = vmatpush.msra.mxu1 %v1139_v5 }
  0xad   :  { %1266 = vmatpush.msrb.mxu2 %v1149_v8  ;;  %1171 = vmatpush.msrb.mxu0 %v2212_v10 }
  0xae   :  { %1146 = vmatpush.msra.mxu1 %v1145_v32 }
  0xaf   :  { %1174 = vmatpush.msrb.mxu0 %v2224_v3 }
  0xb0   :  { %1152 = vmatpush.msra.mxu1 %v1151_v13  ;;  %v237_v40 = vpop.f32.mrf.mxu2 }
  0xb1   :  { %1177 = vmatpush.msrb.mxu0 %v1124_v35 }
  0xb2   :  { %1205 = vmatpush.msrb.mxu1 %v2195_v27 }
  0xb3   :  { %1180 = vmatpush.msrb.mxu0 %v1130_v62 }
  0xb4   :  { %1207 = vmatpush.msrb.mxu1 %v2203_v31 }
  0xb5   :  { %1183 = vmatpush.msrb.mxu0 %v1136_v50 }
  0xb6   :  { %1209 = vmatpush.msrb.mxu1 %v2214_v36 }
  0xb7   :  { %1186 = vmatpush.msrb.mxu0 %v1142_v46 }
  0xb8   :  { %1211 = vmatpush.msrb.mxu1 %v2226_v58 }
  0xb9   :  { %1189 = vmatpush.msrb.mxu0 %v1148_v19 }
  0xba   :  { %1213 = vmatpush.msrb.mxu1 %v2237_v43 }
  0xbc   :  { %1215 = vmatpush.msrb.mxu1 %v1082_v53 }
  0xbe   :  { %v82_v21 = vpop.f32.mrf.mxu0  ;;  %1217 = vmatpush.msrb.mxu1 %v1084_v37 }
  0xc0   :  { %v276_v33 = vpop.f32.mrf.mxu3  ;;  %1219 = vmatpush.msrb.mxu1 %v1086_v14 }
  0xc1   :  { %v183_v23 = vpop.f32.mrf.mxu1 }
  0xc2   :  { %v184_v18 = vadd.f32 %v183_v23, %v82_v21 }
  0xc4   :  { %v238_v52 = vadd.f32 %v237_v40, %v184_v18 }
  0xc6   :  { %v277_v60 = vadd.f32 %v276_v33, %v238_v52 }
  0xc7   :  { %v345_v22 = vpop.f32.mrf.mxu0 }
  0xc8   :  { %v346_v27 = vadd.f32 %v345_v22, %v277_v60 }
  0xca   :  { %v382_v41 = vpop.f32.mrf.mxu1 }
  0xcb   :  { %v383_v31 = vadd.f32 %v382_v41, %v346_v27 }
  0xd2   :  { %v435_v55 = vpop.f32.mrf.mxu2 }
  0xd4   :  { %v516_v26 = vpop.f32.mrf.mxu3 }
  0xd5   :  { %v517_v63 = vadd.f32 %v516_v26, %v435_v55 }
  0xdb   :  { %v562_v49 = vpop.f32.mrf.mxu2 }
  0xdc   :  { %v563_v25 = vadd.f32 %v562_v49, %v517_v63 }
  0xdd   :  { %v597_v38 = vpop.f32.mrf.mxu3 }
  0xde   :  { %v598_v17 = vadd.f32 %v597_v38, %v563_v25 }
  0xdf   :  { %v654_v2 = vpop.f32.mrf.mxu0 }
  0xe0   :  { %v655_v51 = vadd.f32 %v654_v2, %v598_v17 }
  0xe3   :  { %v687_v4 = vpop.f32.mrf.mxu1 }
  0xe4   :  { %v688_v39 = vadd.f32 %v687_v4, %v655_v51 }
  0xe6   :  { %v1051_v16 = vmul.f32 %v688_v39, %v383_v31 }
  0xe8   :  { %v1062_v10 = vsel %vm1060_vm1, %v1051_v16, 0 }
  0xe9   :  { %v1088_v36 = vand.u32 4294901760, %v1062_v10 }
  0xeb   :  { %v1089_v11 = vsub.f32 %v1062_v10, %v1088_v36  ;;  %1154 = vmatmul.f32.vlgmr.msra.gmra.mxu1 %v1088_v36  ;;  %1268 = vmatmul.f32.vlgmr.msrb.gmra.mxu2 %v1088_v36 }
  0xec   :  { %1297 = vmatmul.f32.vlgmr.msrb.gmra.mxu3 %v1088_v36 }
  0xed   :  { %v1090_v6 = vand.u32 4294901760, %v1089_v11 }
  0xef   :  { %v1091_v7 = vsub.f32 %v1089_v11, %v1090_v6 }
  0xf1   :  { %v1092_v3 = vand.u32 4294901760, %v1091_v7 }
  0xf3   :  { %1093 = vmatmul.f32.vlgmr.msra.gmra.mxu0 %v1092_v3  ;;  %1223 = vmatmul.f32.vlgmr.msrb.gmra.mxu1 %v1090_v6 }
  0xfb   :  { %1192 = vmatmul.f32.vlgmr.msrb.gmra.mxu0 %v1089_v11 }
 0x105   :  { %v942_v58 = vpop.f32.mrf.mxu1 }
 0x106   :  { %v903_v20 = vpop.f32.mrf.mxu0 }
 0x107   :  { %v748_v57 = vpop.f32.mrf.mxu2 }
 0x108   :  { %v749_v29 = vadd.f32 %v1310_v24, %v748_v57 }
 0x10a   :  { %v849_v12 = vpop.f32.mrf.mxu3 }
 0x10b   :  { %v850_v61 = vadd.f32 %v849_v12, %v749_v29 }
 0x10d   :  { %v904_v48 = vadd.f32 %v903_v20, %v850_v61 }
 0x10f   :  { %v943_v46 = vadd.f32 %v942_v58, %v904_v48 }
 0x11d   :  { %v1011_v43 = vpop.f32.mrf.mxu2 }
 0x11e   :  { %v1048_v59 = vpop.f32.mrf.mxu3  ;;  %v1012_v54 = vadd.f32 %v1011_v43, %v943_v46 }
 0x120   :  { %v1049_v34 = vadd.f32 %v1048_v59, %v1012_v54 }
 0x168   :  { %v1155_v30 = vpop.f32.mrf.mxu1 }
 0x16e   :  { %v1269_v42 = vpop.f32.mrf.mxu2 }
 0x16f   :  { %v1298_v37 = vpop.f32.mrf.mxu3 }
 0x170   :  { %v1094_v35 = vpop.f32.mrf.mxu0  ;;  %v1224_v62 = vpop.f32.mrf.mxu1 }
 0x171   :  { %v1156_v56 = vadd.f32 %v1155_v30, %v1094_v35 }
 0x178   :  { %v1193_v28 = vpop.f32.mrf.mxu0 }
 0x179   :  { %v1194_v53 = vadd.f32 %v1193_v28, %v1156_v56 }
 0x17b   :  { %v1225_v47 = vadd.f32 %v1224_v62, %v1194_v53 }
 0x17d   :  { %v1270_v50 = vadd.f32 %v1269_v42, %v1225_v47 }
 0x17f   :  { %v1299_v44 = vadd.f32 %v1298_v37, %v1270_v50 }
 0x181   :  { %1311 = vtanh.f32 %v1299_v44 }
 0x187   :  { %v1312_v45 = vpop.eup %1311 }
 0x188   :  { %v1302_v14 = vmul.f32 1.442695, %v1312_v45 }
 0x18a   :  { %1313 = vpow2.f32 %v1302_v14 }
 0x190   :  { %v1314_v0 = vpop.eup %1313 }
 0x191   :  { %v1304_v19 = vmul.f32 %v1314_v0, %v1049_v34 }
 0x193   :  { %1305 = vst [vmem:[%s2274_s7] sm:$0xf] %v1304_v19 }

</bundles_post_ra>
